<compile_context>
chip_gen: v6e
topology: v6e:2x2x1
jax: 0.10.0
libtpu: 0.0.40
codegen_flags: <defaults>
</compile_context>

<pallas_src>
import functools

import jax
import jax.numpy as jnp
from jax import lax
from jax.experimental import pallas as pl
from jax.experimental.pallas import tpu as pltpu

_CP = 8  # sublane padding for each projection's output-channel group


def _self_attn_kernel(x_q_ref, x_k_ref, wq_ref, bq_ref, wkv_ref, bkv_ref,
                      gamma_ref, o_ref, m_ref, l_ref, acc_ref, *, compute_dtype):
    ki = pl.program_id(2)

    @pl.when(ki == 0)
    def _init():
        m_ref[...] = jnp.full(m_ref.shape, -jnp.inf, jnp.float32)
        l_ref[...] = jnp.zeros(l_ref.shape, jnp.float32)
        acc_ref[...] = jnp.zeros(acc_ref.shape, jnp.float32)

    x_q = x_q_ref[0]                       # (C, Tq) f32 (residual kept in f32)
    x_k = x_k_ref[0]                       # (C, Tk) f32
    c = x_q.shape[0]

    xq = x_q.astype(compute_dtype)
    xk = x_k.astype(compute_dtype)
    wq = wq_ref[...].astype(compute_dtype)     # (8,  C), rows >= Cq are zero
    wkv = wkv_ref[...].astype(compute_dtype)   # (16, C), padded rows are zero

    # Projections on the MXU (f32 accumulation). Padded rows come out exactly
    # zero because both the padded weight rows and padded bias rows are zero.
    q = jnp.dot(wq, xq, preferred_element_type=jnp.float32) + bq_ref[...]      # (8, Tq)
    kv = jnp.dot(wkv, xk, preferred_element_type=jnp.float32) + bkv_ref[...]   # (16, Tk)
    k = kv[0:_CP]            # (8, Tk)  (rows >= Cq are zero)
    v = kv[_CP:2 * _CP]      # (8, Tk)  (rows >= C are zero)

    # Transposed score tile: (Tk, Tq) = k^T q, contracting the (padded) channel
    # axis directly -- no explicit transpose, queries remain on the lane axis.
    s_t = lax.dot_general(
        k.astype(compute_dtype), q.astype(compute_dtype),
        dimension_numbers=(((0,), (0,)), ((), ())),
        preferred_element_type=jnp.float32)

    # Online softmax over the key (sublane) axis; stats are f32.
    m_prev = m_ref[...]                                            # (1, Tq)
    m_new = jnp.maximum(m_prev, jnp.max(s_t, axis=0, keepdims=True))
    alpha = jnp.exp(m_prev - m_new)                                # (1, Tq)
    p = jnp.exp(s_t - m_new)                                       # (Tk, Tq)
    l_ref[...] = alpha * l_ref[...] + jnp.sum(p, axis=0, keepdims=True)
    acc_ref[...] = alpha * acc_ref[...] + jnp.dot(
        v.astype(compute_dtype), p.astype(compute_dtype),
        preferred_element_type=jnp.float32)                        # (8, Tq)
    m_ref[...] = m_new

    @pl.when(ki == pl.num_programs(2) - 1)
    def _finalize():
        inv_l = pl.reciprocal(l_ref[...], approx=True)             # (1, Tq), EUP
        attn_out = acc_ref[...] * inv_l                            # (8, Tq) f32
        o_ref[0] = gamma_ref[0, 0] * attn_out[:c] + x_q            # gamma*out + x


def self_attention_pallas(x_nchw, wq, bq, wk, bk, wv, bv, gamma, *,
                          tq=128, tk=128, compute_dtype=jnp.bfloat16):
    """x_nchw: (B, C, H, W) f32. wq/wk: (C//2, C), wv: (C, C), biases 1-D, gamma scalar."""
    B, C, H, W = x_nchw.shape
    N = H * W
    Cq = C // 2
    assert C <= _CP, "channel count must fit a single padded sublane group"

    # Lane-dense layout: (B, C, N) comes straight from the NCHW reshape (no transpose).
    x_bcn = x_nchw.reshape(B, C, N).astype(jnp.float32)

    # Tile sizes (fall back to full N when it doesn't divide evenly). Per-step VMEM
    # footprint is a few hundred KiB -- far below the 32 MiB scoped default on v7x.
    tq = tq if (tq <= N and N % tq == 0) else N
    tk = tk if (tk <= N and N % tk == 0) else N

    f32 = jnp.float32
    # Q projection padded to 8 rows; K and V projections fused into one (16, C) matmul
    # so the in-kernel slices land on sublane-aligned (8-row) boundaries.
    wq_p = jnp.zeros((_CP, C), f32).at[:Cq].set(wq.astype(f32))
    bq_c = jnp.zeros((_CP, 1), f32).at[:Cq, 0].set(bq.astype(f32))
    wkv_p = (jnp.zeros((2 * _CP, C), f32)
             .at[:Cq].set(wk.astype(f32))
             .at[_CP:_CP + C].set(wv.astype(f32)))
    bkv_c = (jnp.zeros((2 * _CP, 1), f32)
             .at[:Cq, 0].set(bk.astype(f32))
             .at[_CP:_CP + C, 0].set(bv.astype(f32)))
    gamma_sc = jnp.asarray(gamma, f32).reshape(1, 1)

    grid = (B, N // tq, N // tk)
    bcast = lambda b, qi, ki: (0, 0)

    kernel = functools.partial(_self_attn_kernel, compute_dtype=compute_dtype)
    out = pl.pallas_call(
        kernel,
        out_shape=jax.ShapeDtypeStruct((B, C, N), jnp.float32),
        grid=grid,
        in_specs=[
            pl.BlockSpec((1, C, tq), lambda b, qi, ki: (b, 0, qi)),   # x, query tile
            pl.BlockSpec((1, C, tk), lambda b, qi, ki: (b, 0, ki)),   # x, key tile
            pl.BlockSpec((_CP, C), bcast),                            # Wq (padded)
            pl.BlockSpec((_CP, 1), bcast),                            # bq column
            pl.BlockSpec((2 * _CP, C), bcast),                        # [Wk; Wv] (padded)
            pl.BlockSpec((2 * _CP, 1), bcast),                        # [bk; bv] column
            pl.BlockSpec(memory_space=pltpu.MemorySpace.SMEM),        # gamma scalar
        ],
        out_specs=pl.BlockSpec((1, C, tq), lambda b, qi, ki: (b, 0, qi)),
        scratch_shapes=[
            pltpu.VMEM((1, tq), jnp.float32),     # m: running row max
            pltpu.VMEM((1, tq), jnp.float32),     # l: running denominator
            pltpu.VMEM((_CP, tq), jnp.float32),   # acc: running numerator
        ],
        compiler_params=pltpu.CompilerParams(
            dimension_semantics=("parallel", "parallel", "arbitrary")),
    )(x_bcn, x_bcn, wq_p, bq_c, wkv_p, bkv_c, gamma_sc)

    return out.reshape(B, C, H, W)


def self_attention_reference(x_nchw, wq, bq, wk, bk, wv, bv, gamma):
    """Pure-JAX reference mirroring the PyTorch SelfAttention.forward."""
    B, C, H, W = x_nchw.shape
    N = H * W
    xf = x_nchw.reshape(B, C, N)                                      # (B, C, N)
    q = jnp.einsum("oc,bcn->bon", wq, xf) + bq[None, :, None]         # (B, C//2, N)
    k = jnp.einsum("oc,bcn->bon", wk, xf) + bk[None, :, None]
    v = jnp.einsum("oc,bcn->bon", wv, xf) + bv[None, :, None]         # (B, C, N)
    scores = jnp.einsum("bcn,bcm->bnm", q, k)                         # (B, N, N)
    attn = jax.nn.softmax(scores, axis=-1)
    out = jnp.einsum("bnm,bcm->bnc", attn, v)                         # (B, N, C)
    out = jnp.transpose(out, (0, 2, 1)).reshape(B, C, H, W)
    return gamma * out + x_nchw


if __name__ == "__main__":
    # SelfAttention(6) as used inside DualBranchCNN's branches.
    B, C, H, W = 2, 6, 16, 16
    key = jax.random.PRNGKey(0)
    kx, kq, kk, kv, kbq, kbk, kbv = jax.random.split(key, 7)

    x = jax.random.normal(kx, (B, C, H, W), jnp.float32)
    # Conv2d(k=1) parameter shapes: weight (out, in) with the trailing 1x1 squeezed.
    wq = 0.2 * jax.random.normal(kq, (C // 2, C), jnp.float32)
    wk = 0.2 * jax.random.normal(kk, (C // 2, C), jnp.float32)
    wv = 0.2 * jax.random.normal(kv, (C, C), jnp.float32)
    bq = 0.1 * jax.random.normal(kbq, (C // 2,), jnp.float32)
    bk = 0.1 * jax.random.normal(kbk, (C // 2,), jnp.float32)
    bv = 0.1 * jax.random.normal(kbv, (C,), jnp.float32)
    # nn.Parameter(torch.zeros(1)) -> gamma starts at 0; use 0.5 so the attention
    # path actually contributes to the checked output.
    gamma = jnp.float32(0.5)

    ref = self_attention_reference(x, wq, bq, wk, bk, wv, bv, gamma)

    # 1) f32 compute path: tight check of the flash/online-softmax structure.
    out_f32 = jax.block_until_ready(
        self_attention_pallas(x, wq, bq, wk, bk, wv, bv, gamma,
                              compute_dtype=jnp.float32))
    assert out_f32.shape == (B, C, H, W)
    err_f32 = float(jnp.max(jnp.abs(out_f32 - ref)))
    assert jnp.allclose(out_f32, ref, atol=5e-3, rtol=5e-3), \
        f"f32 path mismatch vs reference (max abs err {err_f32})"

    # 2) bf16 MXU path (the performance configuration): looser tolerance.
    out_bf16 = jax.block_until_ready(
        self_attention_pallas(x, wq, bq, wk, bk, wv, bv, gamma,
                              compute_dtype=jnp.bfloat16))
    assert out_bf16.shape == (B, C, H, W)
    err_bf16 = float(jnp.max(jnp.abs(out_bf16 - ref)))
    assert jnp.allclose(out_bf16, ref, atol=5e-2, rtol=5e-2), \
        f"bf16 path mismatch vs reference (max abs err {err_bf16})"

    print("KERNEL_OK")
</pallas_src>

<mosaic_0001>
module attributes {stable_mosaic.version = 11 : i64} {
  func.func @_self_attn_kernel(%arg0: i32, %arg1: i32, %arg2: i32, %arg3: memref<1x6x128xf32, #tpu.memory_space<vmem>>, %arg4: memref<1x6x128xf32, #tpu.memory_space<vmem>>, %arg5: memref<8x6xf32, #tpu.memory_space<vmem>>, %arg6: memref<8x1xf32, #tpu.memory_space<vmem>>, %arg7: memref<16x6xf32, #tpu.memory_space<vmem>>, %arg8: memref<16x1xf32, #tpu.memory_space<vmem>>, %arg9: memref<1x1xf32, #tpu.memory_space<smem>>, %arg10: memref<1x6x128xf32, #tpu.memory_space<vmem>>, %arg11: memref<1x128xf32, #tpu.memory_space<vmem>>, %arg12: memref<1x128xf32, #tpu.memory_space<vmem>>, %arg13: memref<8x128xf32, #tpu.memory_space<vmem>>) attributes {dimension_semantics = [#tpu.dimension_semantics<parallel>, #tpu.dimension_semantics<parallel>, #tpu.dimension_semantics<arbitrary>], iteration_bounds = array<i64: 2, 2, 2>, scalar_prefetch = 0 : i64, scratch_operands = 3 : i64, tpu.core_type = #tpu.core_type<tc>, window_params = [{transform_indices = @transform_0, window_bounds = array<i64: 1, 6, 128>}, {transform_indices = @transform_1, window_bounds = array<i64: 1, 6, 128>}, {pipeline_mode = #tpu.pipeline_mode<synchronous>, transform_indices = @transform_2, window_bounds = array<i64: 8, 6>}, {pipeline_mode = #tpu.pipeline_mode<synchronous>, transform_indices = @transform_3, window_bounds = array<i64: 8, 1>}, {pipeline_mode = #tpu.pipeline_mode<synchronous>, transform_indices = @transform_4, window_bounds = array<i64: 16, 6>}, {pipeline_mode = #tpu.pipeline_mode<synchronous>, transform_indices = @transform_5, window_bounds = array<i64: 16, 1>}, {transform_indices = @transform_6, window_bounds = array<i64: 1, 1>}, {transform_indices = @transform_7, window_bounds = array<i64: 1, 6, 128>}]} {
    %c0_i32 = arith.constant 0 : i32
    %0 = arith.cmpi eq, %arg2, %c0_i32 : i32
    %1 = arith.extui %0 : i1 to i32
    %c0_i32_0 = arith.constant 0 : i32
    %2 = arith.cmpi ne, %1, %c0_i32_0 : i32
    scf.if %2 {
      %cst_32 = arith.constant 0xFF800000 : f32
      %45 = vector.broadcast %cst_32 : f32 to vector<1x128xf32>
      %c0_33 = arith.constant 0 : index
      %c0_34 = arith.constant 0 : index
      %46 = vector.load %arg11[%c0_33, %c0_34] : memref<1x128xf32, #tpu.memory_space<vmem>>, vector<1x128xf32>
      tpu.vector_store %arg11[%c0_33, %c0_34], %45 {strides = array<i32>} : memref<1x128xf32, #tpu.memory_space<vmem>>, vector<1x128xf32>,
      %cst_35 = arith.constant 0.000000e+00 : f32
      %47 = vector.broadcast %cst_35 : f32 to vector<1x128xf32>
      %c0_36 = arith.constant 0 : index
      %c0_37 = arith.constant 0 : index
      %48 = vector.load %arg12[%c0_36, %c0_37] : memref<1x128xf32, #tpu.memory_space<vmem>>, vector<1x128xf32>
      tpu.vector_store %arg12[%c0_36, %c0_37], %47 {strides = array<i32>} : memref<1x128xf32, #tpu.memory_space<vmem>>, vector<1x128xf32>,
      %cst_38 = arith.constant 0.000000e+00 : f32
      %49 = vector.broadcast %cst_38 : f32 to vector<8x128xf32>
      %c0_39 = arith.constant 0 : index
      %c0_40 = arith.constant 0 : index
      %50 = vector.load %arg13[%c0_39, %c0_40] : memref<8x128xf32, #tpu.memory_space<vmem>>, vector<8x128xf32>
      tpu.vector_store %arg13[%c0_39, %c0_40], %49 {strides = array<i32>} : memref<8x128xf32, #tpu.memory_space<vmem>>, vector<8x128xf32>,
    } else {
    }
    %c0 = arith.constant 0 : index
    %c0_1 = arith.constant 0 : index
    %c0_2 = arith.constant 0 : index
    %3 = vector.load %arg3[%c0, %c0_1, %c0_2] : memref<1x6x128xf32, #tpu.memory_space<vmem>>, vector<1x6x128xf32>
    %4 = vector.shape_cast %3 : vector<1x6x128xf32> to vector<6x128xf32>
    %c0_3 = arith.constant 0 : index
    %c0_4 = arith.constant 0 : index
    %c0_5 = arith.constant 0 : index
    %5 = vector.load %arg4[%c0_3, %c0_4, %c0_5] : memref<1x6x128xf32, #tpu.memory_space<vmem>>, vector<1x6x128xf32>
    %6 = vector.shape_cast %5 : vector<1x6x128xf32> to vector<6x128xf32>
    %c0_6 = arith.constant 0 : index
    %c0_7 = arith.constant 0 : index
    %7 = vector.load %arg5[%c0_6, %c0_7] : memref<8x6xf32, #tpu.memory_space<vmem>>, vector<8x6xf32>
    %c0_8 = arith.constant 0 : index
    %c0_9 = arith.constant 0 : index
    %8 = vector.load %arg7[%c0_8, %c0_9] : memref<16x6xf32, #tpu.memory_space<vmem>>, vector<16x6xf32>
    %cst = arith.constant dense<0.000000e+00> : vector<8x128xf32>
    %9 = tpu.matmul %7, %4, %cst {dimension_numbers = #tpu.dot_dimension_numbers<[1], [0], [0], [1], [0, 0, 1, 1], [], []>} : vector<8x6xf32>, vector<6x128xf32>, vector<8x128xf32> -> vector<8x128xf32>
    %c0_10 = arith.constant 0 : index
    %c0_11 = arith.constant 0 : index
    %10 = vector.load %arg6[%c0_10, %c0_11] : memref<8x1xf32, #tpu.memory_space<vmem>>, vector<8x1xf32>
    %11 = vector.broadcast %10 : vector<8x1xf32> to vector<8x128xf32>
    %12 = arith.addf %9, %11 : vector<8x128xf32>
    %cst_12 = arith.constant dense<0.000000e+00> : vector<16x128xf32>
    %13 = tpu.matmul %8, %6, %cst_12 {dimension_numbers = #tpu.dot_dimension_numbers<[1], [0], [0], [1], [0, 0, 1, 1], [], []>} : vector<16x6xf32>, vector<6x128xf32>, vector<16x128xf32> -> vector<16x128xf32>
    %c0_13 = arith.constant 0 : index
    %c0_14 = arith.constant 0 : index
    %14 = vector.load %arg8[%c0_13, %c0_14] : memref<16x1xf32, #tpu.memory_space<vmem>>, vector<16x1xf32>
    %15 = vector.broadcast %14 : vector<16x1xf32> to vector<16x128xf32>
    %16 = arith.addf %13, %15 : vector<16x128xf32>
    %17 = vector.extract_strided_slice %16 {offsets = [0, 0], sizes = [8, 128], strides = [1, 1]} : vector<16x128xf32> to vector<8x128xf32>
    %18 = vector.extract_strided_slice %16 {offsets = [8, 0], sizes = [8, 128], strides = [1, 1]} : vector<16x128xf32> to vector<8x128xf32>
    %cst_15 = arith.constant dense<0.000000e+00> : vector<128x128xf32>
    %19 = tpu.matmul %17, %12, %cst_15 {dimension_numbers = #tpu.dot_dimension_numbers<[0], [0], [1], [1], [0, 1, 1, 1], [], []>} : vector<8x128xf32>, vector<8x128xf32>, vector<128x128xf32> -> vector<128x128xf32>
    %c0_16 = arith.constant 0 : index
    %c0_17 = arith.constant 0 : index
    %20 = vector.load %arg11[%c0_16, %c0_17] : memref<1x128xf32, #tpu.memory_space<vmem>>, vector<1x128xf32>
    %cst_18 = arith.constant dense<0xFF800000> : vector<128xf32>
    %21 = vector.multi_reduction <maximumf>, %19, %cst_18 [0] : vector<128x128xf32> to vector<128xf32>
    %22 = vector.shape_cast %21 : vector<128xf32> to vector<1x128xf32>
    %23 = arith.maximumf %20, %22 : vector<1x128xf32>
    %24 = arith.subf %20, %23 : vector<1x128xf32>
    %25 = math.exp %24 : vector<1x128xf32>
    %26 = vector.broadcast %23 : vector<1x128xf32> to vector<128x128xf32>
    %27 = arith.subf %19, %26 : vector<128x128xf32>
    %28 = math.exp %27 : vector<128x128xf32>
    %c0_19 = arith.constant 0 : index
    %c0_20 = arith.constant 0 : index
    %29 = vector.load %arg12[%c0_19, %c0_20] : memref<1x128xf32, #tpu.memory_space<vmem>>, vector<1x128xf32>
    %30 = arith.mulf %25, %29 : vector<1x128xf32>
    %cst_21 = arith.constant dense<0.000000e+00> : vector<128xf32>
    %31 = vector.multi_reduction <add>, %28, %cst_21 [0] : vector<128x128xf32> to vector<128xf32>
    %32 = vector.shape_cast %31 : vector<128xf32> to vector<1x128xf32>
    %33 = arith.addf %30, %32 : vector<1x128xf32>
    %c0_22 = arith.constant 0 : index
    %c0_23 = arith.constant 0 : index
    %34 = vector.load %arg12[%c0_22, %c0_23] : memref<1x128xf32, #tpu.memory_space<vmem>>, vector<1x128xf32>
    tpu.vector_store %arg12[%c0_22, %c0_23], %33 {strides = array<i32>} : memref<1x128xf32, #tpu.memory_space<vmem>>, vector<1x128xf32>,
    %c0_24 = arith.constant 0 : index
    %c0_25 = arith.constant 0 : index
    %35 = vector.load %arg13[%c0_24, %c0_25] : memref<8x128xf32, #tpu.memory_space<vmem>>, vector<8x128xf32>
    %36 = vector.broadcast %25 : vector<1x128xf32> to vector<8x128xf32>
    %37 = arith.mulf %36, %35 : vector<8x128xf32>
    %cst_26 = arith.constant dense<0.000000e+00> : vector<8x128xf32>
    %38 = tpu.matmul %18, %28, %cst_26 {dimension_numbers = #tpu.dot_dimension_numbers<[1], [0], [0], [1], [0, 0, 1, 1], [], []>} : vector<8x128xf32>, vector<128x128xf32>, vector<8x128xf32> -> vector<8x128xf32>
    %39 = arith.addf %37, %38 : vector<8x128xf32>
    %c0_27 = arith.constant 0 : index
    %c0_28 = arith.constant 0 : index
    %40 = vector.load %arg13[%c0_27, %c0_28] : memref<8x128xf32, #tpu.memory_space<vmem>>, vector<8x128xf32>
    tpu.vector_store %arg13[%c0_27, %c0_28], %39 {strides = array<i32>} : memref<8x128xf32, #tpu.memory_space<vmem>>, vector<8x128xf32>,
    %c0_29 = arith.constant 0 : index
    %c0_30 = arith.constant 0 : index
    %41 = vector.load %arg11[%c0_29, %c0_30] : memref<1x128xf32, #tpu.memory_space<vmem>>, vector<1x128xf32>
    tpu.vector_store %arg11[%c0_29, %c0_30], %23 {strides = array<i32>} : memref<1x128xf32, #tpu.memory_space<vmem>>, vector<1x128xf32>,
    %c1_i32 = arith.constant 1 : i32
    %42 = arith.cmpi eq, %arg2, %c1_i32 : i32
    %43 = arith.extui %42 : i1 to i32
    %c0_i32_31 = arith.constant 0 : i32
    %44 = arith.cmpi ne, %43, %c0_i32_31 : i32
    scf.if %44 {
      %c0_32 = arith.constant 0 : index
      %c0_33 = arith.constant 0 : index
      %45 = vector.load %arg12[%c0_32, %c0_33] : memref<1x128xf32, #tpu.memory_space<vmem>>, vector<1x128xf32>
      %46 = tpu.reciprocal %45 {approx = true} : vector<1x128xf32> -> vector<1x128xf32>
      %c0_34 = arith.constant 0 : index
      %c0_35 = arith.constant 0 : index
      %47 = vector.load %arg13[%c0_34, %c0_35] : memref<8x128xf32, #tpu.memory_space<vmem>>, vector<8x128xf32>
      %48 = vector.broadcast %46 : vector<1x128xf32> to vector<8x128xf32>
      %49 = arith.mulf %47, %48 : vector<8x128xf32>
      %c0_36 = arith.constant 0 : index
      %c0_37 = arith.constant 0 : index
      %50 = memref.load %arg9[%c0_36, %c0_37] : memref<1x1xf32, #tpu.memory_space<smem>>
      %51 = vector.extract_strided_slice %49 {offsets = [0, 0], sizes = [6, 128], strides = [1, 1]} : vector<8x128xf32> to vector<6x128xf32>
      %52 = vector.broadcast %50 : f32 to vector<6x128xf32>
      %53 = arith.mulf %52, %51 : vector<6x128xf32>
      %54 = arith.addf %53, %4 : vector<6x128xf32>
      %c0_38 = arith.constant 0 : index
      %c0_39 = arith.constant 0 : index
      %c0_40 = arith.constant 0 : index
      %55 = vector.load %arg10[%c0_38, %c0_39, %c0_40] : memref<1x6x128xf32, #tpu.memory_space<vmem>>, vector<1x6x128xf32>
      %56 = vector.shape_cast %55 : vector<1x6x128xf32> to vector<6x128xf32>
      %57 = vector.shape_cast %54 : vector<6x128xf32> to vector<1x6x128xf32>
      tpu.vector_store %arg10[%c0_38, %c0_39, %c0_40], %57 {strides = array<i32>} : memref<1x6x128xf32, #tpu.memory_space<vmem>>, vector<1x6x128xf32>,
    } else {
    }
    return
  }
  func.func @transform_0(%arg0: i32, %arg1: i32, %arg2: i32) -> (i32, i32, i32) {
    %c0_i32 = arith.constant 0 : i32
    %c0_i32_0 = arith.constant 0 : i32
    return %arg0, %c0_i32, %arg1 : i32, i32, i32
  }
  func.func @transform_1(%arg0: i32, %arg1: i32, %arg2: i32) -> (i32, i32, i32) {
    %c0_i32 = arith.constant 0 : i32
    %c0_i32_0 = arith.constant 0 : i32
    return %arg0, %c0_i32, %arg2 : i32, i32, i32
  }
  func.func @transform_2(%arg0: i32, %arg1: i32, %arg2: i32) -> (i32, i32) {
    %c0_i32 = arith.constant 0 : i32
    %c0_i32_0 = arith.constant 0 : i32
    %c0_i32_1 = arith.constant 0 : i32
    return %c0_i32, %c0_i32_0 : i32, i32
  }
  func.func @transform_3(%arg0: i32, %arg1: i32, %arg2: i32) -> (i32, i32) {
    %c0_i32 = arith.constant 0 : i32
    %c0_i32_0 = arith.constant 0 : i32
    %c0_i32_1 = arith.constant 0 : i32
    return %c0_i32, %c0_i32_0 : i32, i32
  }
  func.func @transform_4(%arg0: i32, %arg1: i32, %arg2: i32) -> (i32, i32) {
    %c0_i32 = arith.constant 0 : i32
    %c0_i32_0 = arith.constant 0 : i32
    %c0_i32_1 = arith.constant 0 : i32
    return %c0_i32, %c0_i32_0 : i32, i32
  }
  func.func @transform_5(%arg0: i32, %arg1: i32, %arg2: i32) -> (i32, i32) {
    %c0_i32 = arith.constant 0 : i32
    %c0_i32_0 = arith.constant 0 : i32
    %c0_i32_1 = arith.constant 0 : i32
    return %c0_i32, %c0_i32_0 : i32, i32
  }
  func.func @transform_6(%arg0: i32, %arg1: i32, %arg2: i32) -> (i32, i32) {
    %c0_i32 = arith.constant 0 : i32
    %c0_i32_0 = arith.constant 0 : i32
    %c0_i32_1 = arith.constant 0 : i32
    return %c0_i32, %c0_i32_0 : i32, i32
  }
  func.func @transform_7(%arg0: i32, %arg1: i32, %arg2: i32) -> (i32, i32, i32) {
    %c0_i32 = arith.constant 0 : i32
    %c0_i32_0 = arith.constant 0 : i32
    return %arg0, %c0_i32, %arg1 : i32, i32, i32
  }
}

</mosaic_0001>

<bundles_post_ra>
// kernel: tpu_custom_call.1
= control target key start
LH: loop header
LB: loop body
LE: loop exit
PB: predicated region body
PF: predicated region fallthrough
CT: control target
= control target key end

     0   :  { %s1431_s26 = smov 0   ;;  %s1433_s27 = smov 0   ;;  %s1624_s0 = inlined_call_operand.vmem [shape: f32[2,6,256], index: 0, kind: input, shape index: {}]   ;;  %s1625_s1 = inlined_call_operand.vmem [shape: f32[2,6,256], index: 1, kind: input, shape index: {}]   ;;  %s1626_s2 = inlined_call_operand.vmem [shape: f32[8,6], index: 2, kind: input, shape index: {}]   ;;  %s1627_s3 = inlined_call_operand.vmem [shape: f32[8,1], index: 3, kind: input, shape index: {}]   ;;  %s1628_s4 = inlined_call_operand.vmem [shape: f32[16,6], index: 4, kind: input, shape index: {}]   ;;  %s1629_s5 = inlined_call_operand.vmem [shape: f32[16,1], index: 5, kind: input, shape index: {}]   ;;  %s1630_s6 = inlined_call_operand.<no memory space> [shape: f32[1,1], index: 6, kind: input, shape index: {}]   ;;  %s1631_s7 = inlined_call_operand.vmem [shape: f32[2,6,256], index: 7, kind: output, shape index: {}]  }
   0x1   :  { %12 = sst [smem:[#allocation5]] %s1630_s6  ;;  %s1435_s28 = smov 0  }
   0x2   :  { %s1437_s29 = smov 0   ;;  %s1439_s30 = smov 0  }
   0x3   :  { %s1441_s8 = smov 0   ;;  %s1443_s9 = smov 0  }
   0x4 LB: > { %s30_s6 = sadd.s32 1, %s1369_s29  ;;  %s33_s10 = sadd.s32 1, %s1373_s30  ;;  %s1381_s9 = sphi %s1443_s9, %s18_s9   ;;  %s1377_s8 = sphi %s1441_s8, %s1639_s8   ;;  %s1373_s30 = sphi %s1439_s30, %s1638_s30   ;;  %s1369_s29 = sphi %s1437_s29, %s1637_s29   ;;  %s1365_s28 = sphi %s1435_s28, %s1636_s28   ;;  %s1361_s27 = sphi %s1433_s27, %s1635_s27   ;;  %s1357_s26 = sphi %s1431_s26, %s1634_s26  }
   0x5   : > { %p31_p0 = scmp.ge.s32.totalorder %s30_s6, 2  ;;  %p1086_p1 = scmp.ge.s32.totalorder %s1381_s9, 1 }
   0x6   : > { %p279_p2 = scmp.lt.s32.totalorder %s1381_s9, 9  ;;  %s37_s11 = sadd.s32 1, %s1377_s8 }
   0x7   : > { %s1641_s6 = smov (%p31_p0, %s30_s6), 0  ;;  %s1643_s10 = smov (!%p31_p0, %s33_s10), %s1373_s30 }
   0x8   : > { %p280_p3 = pnand %p1086_p1, %p279_p2  ;;  %p35_p4 = scmp.ge.s32.totalorder %s1643_s10, 2 }
   0x9   : > { %p325_p6 = scmp.lt.s32.totalorder (!%p280_p3), %s1365_s28, 1  ;;  %p327_p7 = scmp.lt.s32.totalorder (!%p280_p3), %s1361_s27, 1 }
   0xa   : > { %s1645_s10 = smov (%p35_p4, %s1643_s10), 0  ;;  %s1647_s11 = smov (!%p35_p4, %s37_s11), %s1377_s8 }
   0xb   : > { %p39_p5 = scmp.ge.s32.totalorder %s1647_s11, 2  ;;  %283 = sbr.rel (%p280_p3) target bundleno = 911 (0x38f), region = 48 }
   0xc   : > { %p335_p8 = scmp.lt.s32.totalorder (!%p280_p3), %s1357_s26, 1  ;;  %p1093_p9 = scmp.ne.s32.totalorder (!%p280_p3), %s1357_s26, 0 }
   0xd   : > { %s1649_s11 = smov (%p39_p5, %s1647_s11), 0 }
   0xe   : > { %1632 = sst [smem:[#allocation6_spill]] %s1649_s11 }
  0x10   : > { %s1651_s28 = smov (!%p325_p6, %s1365_s28), 1  ;;  %s1653_s27 = smov (!%p327_p7, %s1361_s27), 1 }
  0x11   : > { %s1087_s12 = sshll.u32 %s1651_s28, 1 }
  0x12   : > { %s330_s13 = sadd.s32 %s1087_s12, %s1653_s27 }
  0x13   : > { %s1088_s14 = sshll.u32 %s330_s13, 3 }
  0x14   : > { %s332_s17 = scalar_lea.vmem %s1624_s0, %s1088_s14  ;;  %s1482_s20 = scalar_lea.vmem %s1631_s7, %s1088_s14 }
  0x15   : > { %s336_s21 = scalar_select %p335_p8, %s1357_s26, 1 }
  0x16   : > { %352 = sbr.rel (%p1093_p9) target bundleno = 30 (0x1e), region = 52 }
  0x17   : > { %s338_s22 = sadd.s32 %s1087_s12, %s336_s21 }
  0x18   : > { %s1090_s23 = sshll.u32 %s338_s22, 3 }
  0x19   : > { %s340_s11 = scalar_lea.vmem %s1625_s1, %s1090_s23 }
  0x1b   : > { %v1383_v0 = vmov -inf   ;;  %v1384_v1 = vmov 0.0  }
  0x1c   : > { %353 = vst [vmem:[#allocation2] sm:$0x1] %v1383_v0  ;;  %354 = vst [vmem:[#allocation3] sm:$0x1] %v1384_v1 }
  0x1d   : > { %355 = vst [vmem:[#allocation4] sm:$0xff] %v1384_v1 }
  0x1e PF: > { %v357_v2 = vld [vmem:[%s340_s11] sm:$0x3f]  ;;  %vm371_vm0 = vcmask 1045504   ;;  %vm367_vm1 = vcmask 48128   ;;  %v1385_v4 = vmov 0.0   ;;  %v360_v6 = vld [vmem:[%s1628_s4 + $0x8] sm:$0xff] }
  0x1f   : > { %v359_v3 = vld [vmem:[%s1628_s4] sm:$0xff]  ;;  %1162 = vmatprep.subr.msk.mxu1 %vm371_vm0, %v357_v2  ;;  %1157 = vmatprep.subr.mxu0 %v1385_v4  ;;  %vm1386_vm2 = vmmov 0   ;;  %v1387_v9 = vmov 0   ;;  %v446_v19 = vld [vmem:[%s1629_s5 + $0x8] sm:$0xff]  ;;  %vm573_vm3 = vcmask 64512   ;;  %p1115_p10 = scmp.ne.s32.totalorder %s1357_s26, 1 }
  0x20   : > { %v1493_v5 = vld [vmem:[%s332_s17] sm:$0x3f]  ;;  %1163 = vmatpush3.msk.msra.mxu1 %vm371_vm0, %v357_v2  ;;  %1164 = vmatprep.mubr.msk.f32.mxu1 %vm367_vm1, %v359_v3  ;;  %s967_s22 = sld [smem:[#allocation5]] (!%p1115_p10) }
  0x21   : > { %v358_v7 = vld [vmem:[%s1626_s2] sm:$0xff]  ;;  %1158 = vmatpush3.msk.msra.mxu0 %vm371_vm0, %v1493_v5  ;;  %1159 = vmatprep.mubr.msk.f32.mxu0 %vm1386_vm2, %v1385_v4 }
  0x22   : > { %v445_v8 = vld [vmem:[%s1629_s5] sm:$0xff]  ;;  %1165 = vmatmul.mubr.msk.f32.vlgmr.msra.gmra.mxu1 %vm367_vm1, %v360_v6  ;;  %1160 = vmatmul.mubr.msk.f32.vlgmr.msra.gmra.mxu0 %vm367_vm1, %v358_v7  ;;  %v794_v7 = vlaneseq }
  0x23   : > { %1289 = vset.pattern.permute.xlu0 %v1387_v9  ;;  %1193 = vmatprep.subr.mxu1 %v1385_v4  ;;  %v361_v10 = vld [vmem:[%s1627_s3] sm:$0xff] }
  0x24   : > { %449 = vperm.xlu0 %1289, %v445_v8   ;;  %1225 = vmatprep.mubr.msk.f32.mxu1 %vm1386_vm2, %v1385_v4 }
  0x28   : > { %364 = vperm.xlu0 %1289, %v361_v10   ;;  %v795_v10 = vshrl.u32 %v794_v7, 7 }
  0x9f   : > { %v450_v11 = vpop.permute.xlu0 %449 }
  0xa3   : > { %v365_v12 = vpop.permute.xlu0 %364 }
  0xe2   : > { %v1511_v13 = vpop.f32.mrf.mxu1  ;;  %v441_v14 = vpop.f32.mrf.mxu0 }
  0xe3   : > { %v442_v15 = vadd.f32 %v441_v14, %v365_v12  ;;  %v767_v12 = vld [vmem:[#allocation2] sm:$0x1] }
  0xe4   : > { %v532_v16 = vpop.f32.mrf.mxu1  ;;  %v1161_v17 = vpop.f32.mrf.mxu0 }
  0xe5   : > { %1167 = vmatprep.subr.mxu0 %v442_v15  ;;  %v533_v18 = vadd.f32 %v532_v16, %v450_v11 }
  0xe6   : > { %1168 = vmatpush3.msra.mxu0 %v442_v15  ;;  %v1553_v15 = vsub.s32 0, %v795_v10 }
  0xe7   : > { %541 = vxpose.xlu1.b32.start.end [1/1] (short) %v533_v18, 128 }
 0x105   : > { %1290 = vset.pattern.permute.xlu1 %v1387_v9 }
 0x141   : > { %454 = vperm.xlu1 %1290, %v446_v19  }
 0x163   : > { %v557_v20 = vpop.trf.xlu1 }
 0x164   : > { %1169 = vmatprep.mubr.msk.f32.mxu0 %vm573_vm3, %v557_v20 }
 0x167   : > { %v558_v21 = vpop.trf.xlu1 }
 0x168   : > { %1170 = vmatmul.mubr.msk.f32.vlgmr.msra.gmra.mxu0 %vm573_vm3, %v558_v21 }
 0x16b   : > { %v559_v22 = vpop.trf.xlu1 }
 0x16c   : > { %1172 = vmatprep.mubr.msk.f32.mxu0 %vm573_vm3, %v559_v22 }
 0x16f   : > { %v560_v23 = vpop.trf.xlu1 }
 0x170   : > { %1173 = vmatmul.mubr.msk.f32.gmra.mxu0 %vm573_vm3, %v560_v23 }
 0x173   : > { %v561_v24 = vpop.trf.xlu1 }
 0x174   : > { %1175 = vmatprep.mubr.msk.f32.mxu0 %vm573_vm3, %v561_v24 }
 0x177   : > { %v562_v25 = vpop.trf.xlu1 }
 0x178   : > { %1176 = vmatmul.mubr.msk.f32.gmra.mxu0 %vm573_vm3, %v562_v25 }
 0x17b   : > { %v563_v26 = vpop.trf.xlu1 }
 0x17c   : > { %1178 = vmatprep.mubr.msk.f32.mxu0 %vm573_vm3, %v563_v26 }
 0x17f   : > { %v564_v27 = vpop.trf.xlu1 }
 0x180   : > { %1179 = vmatmul.mubr.msk.f32.gmra.mxu0 %vm573_vm3, %v564_v27 }
 0x183   : > { %v565_v28 = vpop.trf.xlu1 }
 0x184   : > { %1181 = vmatprep.mubr.msk.f32.mxu0 %vm573_vm3, %v565_v28 }
 0x187   : > { %v566_v29 = vpop.trf.xlu1 }
 0x188   : > { %1182 = vmatmul.mubr.msk.f32.gmra.mxu0 %vm573_vm3, %v566_v29 }
 0x18b   : > { %v567_v30 = vpop.trf.xlu1 }
 0x18c   : > { %1184 = vmatprep.mubr.msk.f32.mxu0 %vm573_vm3, %v567_v30 }
 0x18f   : > { %v568_v31 = vpop.trf.xlu1 }
 0x190   : > { %1185 = vmatmul.mubr.msk.f32.gmra.mxu0 %vm573_vm3, %v568_v31 }
 0x193   : > { %v569_v32 = vpop.trf.xlu1 }
 0x194   : > { %1187 = vmatprep.mubr.msk.f32.mxu0 %vm573_vm3, %v569_v32 }
 0x197   : > { %v570_v33 = vpop.trf.xlu1 }
 0x198   : > { %1188 = vmatmul.mubr.msk.f32.gmra.mxu0 %vm573_vm3, %v570_v33 }
 0x19b   : > { %v571_v34 = vpop.trf.xlu1 }
 0x19c   : > { %1190 = vmatprep.mubr.msk.f32.mxu0 %vm573_vm3, %v571_v34 }
 0x19f   : > { %v572_v35 = vpop.trf.xlu1 }
 0x1a0   : > { %1191 = vmatmul.mubr.msk.f32.gmra.mxu0 %vm573_vm3, %v572_v35 }
 0x228   : > { %v1171_v36 = vpop.f32.mrf.mxu0 }
 0x22a   : > { %v688_v37 = vpop.f32.mrf.mxu0 }
 0x230   : > { %v1174_v38 = vpop.f32.mrf.mxu0 }
 0x232   : > { %v698_v39 = vpop.f32.mrf.mxu0 }
 0x238   : > { %v1177_v40 = vpop.f32.mrf.mxu0 }
 0x239   : > { %v769_v51 = vmax.f32 %v1171_v36, %v1177_v40 }
 0x23a   : > { %v708_v41 = vpop.f32.mrf.mxu0 }
 0x23b   : > { %v768_v49 = vmax.f32 %v688_v37, %v708_v41 }
 0x240   : > { %v1532_v42 = vpop.f32.mrf.mxu0 }
 0x241   : > { %v771_v52 = vmax.f32 %v1174_v38, %v1532_v42 }
 0x242   : > { %v718_v43 = vpop.f32.mrf.mxu0 }
 0x243   : > { %v770_v53 = vmax.f32 %v698_v39, %v718_v43 }
 0x248   : > { %v1534_v44 = vpop.f32.mrf.mxu0 }
 0x249   : > { %v773_v56 = vmax.f32 %v769_v51, %v1534_v44 }
 0x24a   : > { %v1536_v45 = vpop.f32.mrf.mxu0 }
 0x24b   : > { %v772_v54 = vmax.f32 %v768_v49, %v1536_v45 }
 0x250   : > { %v1538_v46 = vpop.f32.mrf.mxu0 }
 0x251   : > { %v775_v57 = vmax.f32 %v771_v52, %v1538_v46 }
 0x252   : > { %v1540_v47 = vpop.f32.mrf.mxu0 }
 0x253   : > { %v774_v58 = vmax.f32 %v770_v53, %v1540_v47 }
 0x258   : > { %v1542_v48 = vpop.f32.mrf.mxu0 }
 0x259   : > { %v777_v61 = vmax.f32 %v773_v56, %v1542_v48 }
 0x25a   : > { %v1544_v50 = vpop.f32.mrf.mxu0 }
 0x25b   : > { %v776_v59 = vmax.f32 %v772_v54, %v1544_v50 }
 0x25d   : > { %v780_v0 = vmax.f32 %v776_v59, %v777_v61 }
 0x260   : > { %v1192_v55 = vpop.f32.mrf.mxu0 }
 0x261   : > { %v779_v62 = vmax.f32 %v775_v57, %v1192_v55 }
 0x262   : > { %v758_v60 = vpop.f32.mrf.mxu0 }
 0x263   : > { %v778_v63 = vmax.f32 %v774_v58, %v758_v60 }
 0x265   : > { %v781_v1 = vmax.f32 %v778_v63, %v779_v62 }
 0x267   : > { %v782_v2 = vmax.f32 %v780_v0, %v781_v1 }
 0x269   : > { %v783_v3 = vrot.slane %v782_v2, 4 }
 0x26b   : > { %v784_v6 = vmax.f32 %v782_v2, %v783_v3 }
 0x26d   : > { %v785_v8 = vrot.slane %v784_v6, 2 }
 0x26f   : > { %v786_v9 = vmax.f32 %v784_v6, %v785_v8 }
 0x271   : > { %v787_v11 = vrot.slane %v786_v9, 1 }
 0x273   : > { %v788_v14 = vmax.f32 %v786_v9, %v787_v11 }
 0x275   : > { %v789_v16 = vmax.f32 %v767_v12, %v788_v14 }
 0x277   : > { %v790_v17 = vsub.f32 %v767_v12, %v789_v16  ;;  %v797_v18 = vrot.slane %v789_v16, %v1553_v15  ;;  %952 = vst [vmem:[#allocation2] sm:$0x1] %v789_v16 }
 0x279   : > { %v791_v19 = vmul.f32 1.442695, %v790_v17  ;;  %v799_v20 = vsub.f32 %v688_v37, %v797_v18  ;;  %v800_v21 = vsub.f32 %v1171_v36, %v797_v18  ;;  %v801_v22 = vsub.f32 %v698_v39, %v797_v18 }
 0x27a   : > { %v802_v23 = vsub.f32 %v1174_v38, %v797_v18  ;;  %v803_v26 = vsub.f32 %v708_v41, %v797_v18  ;;  %v804_v28 = vsub.f32 %v1177_v40, %v797_v18  ;;  %v805_v30 = vsub.f32 %v718_v43, %v797_v18 }
 0x27b   : > { %1291 = vpow2.f32 %v791_v19  ;;  %v815_v24 = vmul.f32 1.442695, %v799_v20  ;;  %v817_v25 = vmul.f32 1.442695, %v800_v21  ;;  %v819_v27 = vmul.f32 1.442695, %v801_v22 }
 0x27c   : > { %v821_v29 = vmul.f32 1.442695, %v802_v23  ;;  %v823_v31 = vmul.f32 1.442695, %v803_v26  ;;  %v806_v32 = vsub.f32 %v1532_v42, %v797_v18  ;;  %v825_v33 = vmul.f32 1.442695, %v804_v28 }
 0x27d   : > { %1293 = vpow2.f32 %v815_v24  ;;  %v807_v34 = vsub.f32 %v1536_v45, %v797_v18  ;;  %v814_v35 = vsub.f32 %v1192_v55, %v797_v18  ;;  %v827_v36 = vmul.f32 1.442695, %v805_v30 }
 0x27e   : > { %1295 = vpow2.f32 %v817_v25  ;;  %v808_v37 = vsub.f32 %v1534_v44, %v797_v18  ;;  %v813_v39 = vsub.f32 %v758_v60, %v797_v18  ;;  %v829_v40 = vmul.f32 1.442695, %v806_v32 }
 0x27f   : > { %1297 = vpow2.f32 %v819_v27  ;;  %v809_v41 = vsub.f32 %v1540_v47, %v797_v18  ;;  %v831_v43 = vmul.f32 1.442695, %v807_v34  ;;  %v812_v49 = vsub.f32 %v1542_v48, %v797_v18 }
 0x280   : > { %1299 = vpow2.f32 %v821_v29  ;;  %v845_v45 = vmul.f32 1.442695, %v814_v35  ;;  %v810_v51 = vsub.f32 %v1538_v46, %v797_v18  ;;  %v833_v52 = vmul.f32 1.442695, %v808_v37  ;;  %v847_v29 = vld [vmem:[#allocation3] sm:$0x1] }
 0x281   : > { %1301 = vpow2.f32 %v823_v31  ;;  %v811_v44 = vsub.f32 %v1544_v50, %v797_v18  ;;  %v843_v54 = vmul.f32 1.442695, %v813_v39  ;;  %v835_v47 = vmul.f32 1.442695, %v809_v41  ;;  %v455_v31 = vpop.permute.xlu1 %454 }
 0x282   : > { %1303 = vpow2.f32 %v825_v33  ;;  %v841_v56 = vmul.f32 1.442695, %v812_v49  ;;  %v837_v46 = vmul.f32 1.442695, %v810_v51  ;;  %v538_v35 = vadd.f32 %v1511_v13, %v455_v31 }
 0x283   : > { %1305 = vpow2.f32 %v827_v36  ;;  %v839_v58 = vmul.f32 1.442695, %v811_v44  ;;  %v872_v36 = vld [vmem:[#allocation4] sm:$0xff] }
 0x284   : > { %1307 = vpow2.f32 %v829_v40 }
 0x285   : > { %1309 = vpow2.f32 %v831_v43 }
 0x286   : > { %1311 = vpow2.f32 %v845_v45 }
 0x287   : > { %1313 = vpow2.f32 %v833_v52 }
 0x288   : > { %v1559_v38 = vpop.eup %1291  ;;  %1315 = vpow2.f32 %v843_v54 }
 0x289   : > { %v877_v42 = vrot.slane %v1559_v38, %v1553_v15  ;;  %1317 = vpow2.f32 %v835_v47  ;;  %v848_v32 = vmul.f32 %v1559_v38, %v847_v29 }
 0x28a   : > { %v1566_v53 = vpop.eup %1293  ;;  %1319 = vpow2.f32 %v841_v56 }
 0x28b   : > { %v1569_v55 = vpop.eup %1295  ;;  %1321 = vpow2.f32 %v837_v46  ;;  %v879_v37 = vmul.f32 %v877_v42, %v872_v36 }
 0x28c   : > { %v849_v48 = vadd.f32 %v1569_v55, %v1566_v53  ;;  %v1573_v57 = vpop.eup %1297  ;;  %1323 = vpow2.f32 %v839_v58 }
 0x28d   : > { %v1300_v50 = vpop.eup %1299 }
 0x28e   : > { %v850_v59 = vadd.f32 %v1573_v57, %v849_v48  ;;  %v1302_v61 = vpop.eup %1301 }
 0x28f   : > { %v1304_v63 = vpop.eup %1303 }
 0x290   : > { %v851_v60 = vadd.f32 %v1300_v50, %v850_v59  ;;  %v1306_v1 = vpop.eup %1305 }
 0x291   : > { %v1308_v3 = vpop.eup %1307 }
 0x292   : > { %v852_v62 = vadd.f32 %v1302_v61, %v851_v60  ;;  %v1310_v6 = vpop.eup %1309 }
 0x293   : > { %v1312_v8 = vpop.eup %1311 }
 0x294   : > { %v853_v0 = vadd.f32 %v1304_v63, %v852_v62  ;;  %v1314_v9 = vpop.eup %1313  ;;  %1194 = vmatpush3.msra.mxu1 %v1312_v8 }
 0x295   : > { %v1316_v11 = vpop.eup %1315  ;;  %1195 = vmatprep.subr.mxu1 %v1385_v4 }
 0x296   : > { %v854_v2 = vadd.f32 %v1306_v1, %v853_v0  ;;  %v1318_v12 = vpop.eup %1317  ;;  %1196 = vmatpush3.msra.mxu1 %v1316_v11 }
 0x297   : > { %v1320_v16 = vpop.eup %1319  ;;  %1197 = vmatprep.subr.mxu1 %v1385_v4 }
 0x298   : > { %v855_v7 = vadd.f32 %v1308_v3, %v854_v2  ;;  %v1322_v17 = vpop.eup %1321  ;;  %1198 = vmatpush3.msra.mxu1 %v1320_v16 }
 0x299   : > { %v1324_v19 = vpop.eup %1323  ;;  %1199 = vmatprep.subr.mxu1 %v1385_v4 }
 0x29a   : > { %v856_v10 = vadd.f32 %v1310_v6, %v855_v7  ;;  %1200 = vmatpush3.msra.mxu1 %v1324_v19 }
 0x29b   : > { %1201 = vmatprep.subr.mxu1 %v1385_v4 }
 0x29c   : > { %v857_v14 = vadd.f32 %v1314_v9, %v856_v10  ;;  %1202 = vmatpush3.msra.mxu1 %v1322_v17 }
 0x29d   : > { %1203 = vmatprep.subr.mxu1 %v1385_v4 }
 0x29e   : > { %v858_v18 = vadd.f32 %v1318_v12, %v857_v14  ;;  %1204 = vmatpush3.msra.mxu1 %v1318_v12 }
 0x29f   : > { %1205 = vmatprep.subr.mxu1 %v1385_v4 }
 0x2a0   : > { %v859_v20 = vadd.f32 %v1322_v17, %v858_v18  ;;  %1206 = vmatpush3.msra.mxu1 %v1314_v9 }
 0x2a1   : > { %1207 = vmatprep.subr.mxu1 %v1385_v4 }
 0x2a2   : > { %v860_v21 = vadd.f32 %v1324_v19, %v859_v20  ;;  %1208 = vmatpush3.msra.mxu1 %v1310_v6 }
 0x2a3   : > { %1209 = vmatprep.subr.mxu1 %v1385_v4 }
 0x2a4   : > { %v861_v22 = vadd.f32 %v1320_v16, %v860_v21  ;;  %1210 = vmatpush3.msra.mxu1 %v1308_v3 }
 0x2a5   : > { %1211 = vmatprep.subr.mxu1 %v1385_v4 }
 0x2a6   : > { %v862_v23 = vadd.f32 %v1316_v11, %v861_v22  ;;  %1212 = vmatpush3.msra.mxu1 %v1306_v1 }
 0x2a7   : > { %1213 = vmatprep.subr.mxu1 %v1385_v4 }
 0x2a8   : > { %v863_v24 = vadd.f32 %v1312_v8, %v862_v23  ;;  %1214 = vmatpush3.msra.mxu1 %v1304_v63 }
 0x2a9   : > { %1215 = vmatprep.subr.mxu1 %v1385_v4 }
 0x2aa   : > { %v864_v25 = vrot.slane %v863_v24, 4  ;;  %1216 = vmatpush3.msra.mxu1 %v1302_v61 }
 0x2ab   : > { %1217 = vmatprep.subr.mxu1 %v1385_v4 }
 0x2ac   : > { %v865_v26 = vadd.f32 %v864_v25, %v863_v24  ;;  %1218 = vmatpush3.msra.mxu1 %v1300_v50 }
 0x2ad   : > { %1219 = vmatprep.subr.mxu1 %v1385_v4 }
 0x2ae   : > { %v866_v27 = vrot.slane %v865_v26, 2  ;;  %1220 = vmatpush3.msra.mxu1 %v1573_v57 }
 0x2af   : > { %1221 = vmatprep.subr.mxu1 %v1385_v4 }
 0x2b0   : > { %v867_v28 = vadd.f32 %v866_v27, %v865_v26  ;;  %1222 = vmatpush3.msra.mxu1 %v1569_v55 }
 0x2b1   : > { %1223 = vmatprep.subr.mxu1 %v1385_v4 }
 0x2b2   : > { %v868_v30 = vrot.slane %v867_v28, 1  ;;  %1224 = vmatpush3.msra.mxu1 %v1566_v53 }
 0x2b3   : > { %1226 = vmatmul.mubr.f32.vlgmr.msra.gmra.mxu1 %v538_v35 }
 0x2b4   : > { %v869_v33 = vadd.f32 %v868_v30, %v867_v28 }
 0x2b6   : > { %v870_v34 = vadd.f32 %v869_v33, %v848_v32 }
 0x2b8   : > { %871 = vst [vmem:[#allocation3] sm:$0x1] %v870_v34 }
 0x372   : > { %956 = sbr.rel (%p1115_p10) target bundleno = 911 (0x38f), region = 56 }
 0x373   : > { %v946_v39 = vpop.f32.mrf.mxu1 }
 0x374   : > { %v950_v40 = vadd.f32 %v946_v39, %v879_v37 }
 0x375   : > { %v1227_v41 = vpop.f32.mrf.mxu1 }
 0x376   : > { %951 = vst [vmem:[#allocation4] sm:$0xff] %v950_v40 }
 0x377   : > { %v957_v43 = vld [vmem:[#allocation3] sm:$0x1]  ;;  %v968_v45 = vstv %s967_s22 }
 0x378   : > { %1325 = vrcp.f32 %v957_v43 }
 0x37d   : > { %v959_v13 = vld [vmem:[#allocation4] sm:$0xff] }
 0x385   : > { %v1326_v4 = vpop.eup %1325 }
 0x386   : > { %v964_v49 = vrot.slane %v1326_v4, %v1553_v15 }
 0x388   : > { %v966_v51 = vmul.f32 %v964_v49, %v959_v13 }
 0x38a   : > { %v969_v52 = vmul.f32 %v968_v45, %v966_v51 }
 0x38c   : > { %v970_v38 = vadd.f32 %v969_v52, %v1493_v5 }
 0x38e   : > { %971 = vst [vmem:[%s1482_s20] sm:$0x3f] %v970_v38 }
 0x38f PF: > { %s18_s9 = sadd.s32 1, %s1381_s9   ;;  %s1633_s23 = sld [smem:[#allocation6_spill]] }
 0x390   : > { %p15_p11 = scmp.ge.s32.totalorder %s18_s9, 10   ;;  %s1634_s26 = smov %s1369_s29 }
 0x391   : > { %s1635_s27 = smov %s1373_s30  ;;  %s1636_s28 = smov %s1377_s8 }
 0x392   : > { %s1637_s29 = smov %s1641_s6  ;;  %s1638_s30 = smov %s1645_s10 }
 0x393   :  { %17 = sbr.rel (!%p15_p11) target bundleno = 4 (0x4), region = 89 }
 0x395   : > { %s1639_s8 = smov %s1633_s23 }

</bundles_post_ra>
